<compile_context>
chip_gen: v7x
topology: tpu7x:2x2x1
jax: 0.10.0
libtpu: 0.0.40
codegen_flags: <defaults>
</compile_context>

<pallas_src>
import jax
import jax.numpy as jnp
from jax import lax
from jax.experimental import pallas as pl
from jax.experimental.pallas import tpu as pltpu


def _round_up(n, m):
    return ((n + m - 1) // m) * m


def _num_tensorcores_per_chip():
    """Best-effort core count (2 on v7x / megacore parts); only affects tiling."""
    try:
        kind = jax.devices()[0].device_kind.lower()
    except Exception:
        return 1
    return 2 if any(t in kind for t in ("v7", "v5p", "v4")) else 1


def sqnetwork_kernel(x_ref, w1_ref, b1_ref, w2_ref, b2_ref, wq_ref, bq_ref, o_ref):
    # Cast the f32 x tile to bf16 in-kernel (no extra wrapper HBM pass over x).
    x = x_ref[...].astype(jnp.bfloat16)
    # fc1 + relu: bf16 MXU matmul, f32 accumulation.
    h1 = jnp.dot(x, w1_ref[...], preferred_element_type=jnp.float32)
    h1 = jnp.maximum(h1 + b1_ref[...], 0.0)
    # fc2 + relu: re-quantize activation to bf16 for the MXU, accumulate f32.
    h2 = jnp.dot(h1.astype(jnp.bfloat16), w2_ref[...],
                 preferred_element_type=jnp.float32)
    h2 = jnp.maximum(h2 + b2_ref[...], 0.0)
    # fcq (hidden -> 1): contract wq (1,H) with h2 (TM,H) over H to produce a
    # lane-dense (1, TM) row (dense writeback instead of a masked (TM,1) column).
    q = lax.dot_general(wq_ref[...], h2,
                        dimension_numbers=(((1,), (1,)), ((), ())),
                        preferred_element_type=jnp.float32)
    o_ref[0] = q + bq_ref[...]


def _choose_tiling(B, K, H, *, max_tm=8192, vmem_budget=24 << 20):
    """Rows-per-tile (multiple of 8) and grid size, derived from a VMEM budget."""
    n_cores = _num_tensorcores_per_chip()
    # Resident weights/biases (double-buffered by the default pipeline).
    weight_bytes = 2 * (2 * K * H + 2 * H * H + 3 * 4 * H + 4)
    # Approx VMEM bytes per batch row: f32 x double-buffer + bf16 copy,
    # f32 h1/h2 + bf16 h1 copy, double-buffered output row.
    per_row = (2 * 4 + 2) * K + 10 * H + 16
    tm_cap = max(8, (vmem_budget - weight_bytes) // per_row)
    tm_cap = min(tm_cap, max_tm)

    num_tiles = max(1, pl.cdiv(B, tm_cap))
    if n_cores > 1 and B >= 8 * n_cores:
        # Keep the grid a multiple of the core count so the "parallel" batch
        # axis load-balances across TensorCores (v7x / megacore).
        num_tiles = _round_up(max(num_tiles, n_cores), n_cores)
    tm = _round_up(pl.cdiv(B, num_tiles), 8)
    num_tiles = pl.cdiv(B, tm)
    return tm, num_tiles


def sqnetwork_forward(x, params, *, max_tm=8192):
    """x: (B, input_size) float32; params: w1,b1,w2,b2,wq,bq (in,out layout)."""
    B, K = x.shape
    H = params["w1"].shape[1]

    TM, num_tiles = _choose_tiling(B, K, H, max_tm=max_tm)

    # Weights are tiny; pre-cast matmul weights to bf16 once.
    w1 = params["w1"].astype(jnp.bfloat16)
    w2 = params["w2"].astype(jnp.bfloat16)
    b1 = params["b1"].reshape(1, H).astype(jnp.float32)
    b2 = params["b2"].reshape(1, H).astype(jnp.float32)
    wq = params["wq"].reshape(1, H).astype(jnp.float32)
    bq = params["bq"].reshape(1, 1).astype(jnp.float32)

    # Weights/biases: full-array blocks with constant index_maps -> fetched
    # once and VMEM-resident across the batch grid.
    # TODO(synk): for very large H, mark these pipeline_mode=pl.Buffered(1) to
    # avoid double-buffering resident weights (irrelevant at H=32).
    const = lambda a: pl.BlockSpec(a.shape, lambda i: (0, 0))

    flops = 2 * B * (K * H + H * H + H)
    bytes_accessed = (x.size * 4 + w1.size * 2 + w2.size * 2
                      + (b1.size + b2.size + wq.size + bq.size) * 4
                      + num_tiles * TM * 4)
    cost = pl.CostEstimate(flops=int(flops), transcendentals=0,
                           bytes_accessed=int(bytes_accessed))

    out = pl.pallas_call(
        sqnetwork_kernel,
        out_shape=jax.ShapeDtypeStruct((num_tiles, 1, TM), jnp.float32),
        grid=(num_tiles,),
        in_specs=[
            # x tile streams in; the last block overhangs when B % TM != 0.
            pl.BlockSpec((TM, K), lambda i: (i, 0)),
            const(w1), const(b1), const(w2), const(b2), const(wq), const(bq),
        ],
        out_specs=pl.BlockSpec((1, 1, TM), lambda i: (i, 0, 0)),
        compiler_params=pltpu.CompilerParams(
            dimension_semantics=("parallel",),
            vmem_limit_bytes=32 * 1024 * 1024),
        cost_estimate=cost,
    )(x.astype(jnp.float32), w1, b1, w2, b2, wq, bq)

    # Lane-dense (num_tiles, 1, TM) rows -> (B, 1); overhang rows discarded.
    return out.reshape(num_tiles * TM)[:B].reshape(B, 1)


def init_params(key, input_size, hidden_size):
    """Deterministic init mimicking nn.Linear's U(-1/sqrt(fan_in), 1/sqrt(fan_in))."""
    ks = jax.random.split(key, 6)

    def lin(kw, kb, fan_in, fan_out):
        bound = 1.0 / jnp.sqrt(fan_in)
        w = jax.random.uniform(kw, (fan_in, fan_out), jnp.float32, -bound, bound)
        b = jax.random.uniform(kb, (1, fan_out), jnp.float32, -bound, bound)
        return w, b

    w1, b1 = lin(ks[0], ks[1], input_size, hidden_size)
    w2, b2 = lin(ks[2], ks[3], hidden_size, hidden_size)
    wq, bq = lin(ks[4], ks[5], hidden_size, 1)
    return {"w1": w1, "b1": b1, "w2": w2, "b2": b2, "wq": wq, "bq": bq}


def _reference(x, params, *, bf16=True):
    """Pure-JAX reference. With bf16=True it mirrors the kernel's casts."""
    if bf16:
        xb = x.astype(jnp.bfloat16)
        w1 = params["w1"].astype(jnp.bfloat16)
        w2 = params["w2"].astype(jnp.bfloat16)
        h1 = jnp.dot(xb, w1, preferred_element_type=jnp.float32) + params["b1"]
        h1 = jnp.maximum(h1, 0.0)
        h2 = jnp.dot(h1.astype(jnp.bfloat16), w2,
                     preferred_element_type=jnp.float32) + params["b2"]
        h2 = jnp.maximum(h2, 0.0)
    else:
        h1 = jnp.maximum(x @ params["w1"] + params["b1"], 0.0)
        h2 = jnp.maximum(h1 @ params["w2"] + params["b2"], 0.0)
    return h2 @ params["wq"] + params["bq"]


if __name__ == "__main__":
    input_size = 16
    hidden_size = 32

    key = jax.random.PRNGKey(0)
    kx, kp, kx2 = jax.random.split(key, 3)
    params = init_params(kp, input_size, hidden_size)

    # Small single-tile case.
    batch = 8
    x = jax.random.normal(kx, (batch, input_size), jnp.float32)
    out = jax.block_until_ready(sqnetwork_forward(x, params))
    assert out.shape == (batch, 1)
    ref_bf16 = _reference(x, params, bf16=True)
    ref_f32 = _reference(x, params, bf16=False)
    assert jnp.allclose(out, ref_bf16, atol=1e-4, rtol=1e-3)
    assert jnp.allclose(out, ref_f32, atol=5e-2, rtol=5e-2)

    # Multi-tile grid with an overhanging last block (no wrapper-side padding),
    # forced by capping TM at 512.
    batch2 = 1040
    x2 = jax.random.normal(kx2, (batch2, input_size), jnp.float32)
    out2 = jax.block_until_ready(sqnetwork_forward(x2, params, max_tm=512))
    assert out2.shape == (batch2, 1)
    ref2 = _reference(x2, params, bf16=True)
    assert jnp.allclose(out2, ref2, atol=1e-4, rtol=1e-3)

    # Default adaptive tiling (one big tile on 1-TC chips, even split on 2-TC).
    out3 = jax.block_until_ready(sqnetwork_forward(x2, params))
    assert out3.shape == (batch2, 1)
    assert jnp.allclose(out3, ref2, atol=1e-4, rtol=1e-3)

    print("KERNEL_OK")
</pallas_src>

<mosaic_0001>
module attributes {stable_mosaic.version = 11 : i64} {
  func.func @sqnetwork_kernel(%arg0: i32, %arg1: memref<8x16xf32, #tpu.memory_space<vmem>>, %arg2: memref<16x32xbf16, #tpu.memory_space<vmem>>, %arg3: memref<1x32xf32, #tpu.memory_space<vmem>>, %arg4: memref<32x32xbf16, #tpu.memory_space<vmem>>, %arg5: memref<1x32xf32, #tpu.memory_space<vmem>>, %arg6: memref<1x32xf32, #tpu.memory_space<vmem>>, %arg7: memref<1x1xf32, #tpu.memory_space<vmem>>, %arg8: memref<1x1x8xf32, #tpu.memory_space<vmem>>) attributes {dimension_semantics = [#tpu.dimension_semantics<parallel>], iteration_bounds = array<i64: 1>, scalar_prefetch = 0 : i64, scratch_operands = 0 : i64, tpu.core_type = #tpu.core_type<tc>, window_params = [{transform_indices = @transform_0, window_bounds = array<i64: 8, 16>}, {pipeline_mode = #tpu.pipeline_mode<synchronous>, transform_indices = @transform_1, window_bounds = array<i64: 16, 32>}, {pipeline_mode = #tpu.pipeline_mode<synchronous>, transform_indices = @transform_2, window_bounds = array<i64: 1, 32>}, {pipeline_mode = #tpu.pipeline_mode<synchronous>, transform_indices = @transform_3, window_bounds = array<i64: 32, 32>}, {pipeline_mode = #tpu.pipeline_mode<synchronous>, transform_indices = @transform_4, window_bounds = array<i64: 1, 32>}, {pipeline_mode = #tpu.pipeline_mode<synchronous>, transform_indices = @transform_5, window_bounds = array<i64: 1, 32>}, {pipeline_mode = #tpu.pipeline_mode<synchronous>, transform_indices = @transform_6, window_bounds = array<i64: 1, 1>}, {transform_indices = @transform_7, window_bounds = array<i64: 1, 1, 8>}]} {
    %c0 = arith.constant 0 : index
    %c0_0 = arith.constant 0 : index
    %0 = vector.load %arg1[%c0, %c0_0] : memref<8x16xf32, #tpu.memory_space<vmem>>, vector<8x16xf32>
    %1 = arith.truncf %0 : vector<8x16xf32> to vector<8x16xbf16>
    %c0_1 = arith.constant 0 : index
    %c0_2 = arith.constant 0 : index
    %2 = vector.load %arg2[%c0_1, %c0_2] : memref<16x32xbf16, #tpu.memory_space<vmem>>, vector<16x32xbf16>
    %cst = arith.constant dense<0.000000e+00> : vector<8x32xf32>
    %3 = tpu.matmul %1, %2, %cst {dimension_numbers = #tpu.dot_dimension_numbers<[1], [0], [0], [1], [0, 0, 1, 1], [], []>} : vector<8x16xbf16>, vector<16x32xbf16>, vector<8x32xf32> -> vector<8x32xf32>
    %c0_3 = arith.constant 0 : index
    %c0_4 = arith.constant 0 : index
    %4 = vector.load %arg3[%c0_3, %c0_4] : memref<1x32xf32, #tpu.memory_space<vmem>>, vector<1x32xf32>
    %5 = vector.broadcast %4 : vector<1x32xf32> to vector<8x32xf32>
    %6 = arith.addf %3, %5 : vector<8x32xf32>
    %cst_5 = arith.constant 0.000000e+00 : f32
    %7 = vector.broadcast %cst_5 : f32 to vector<8x32xf32>
    %8 = arith.maximumf %6, %7 : vector<8x32xf32>
    %9 = arith.truncf %8 : vector<8x32xf32> to vector<8x32xbf16>
    %c0_6 = arith.constant 0 : index
    %c0_7 = arith.constant 0 : index
    %10 = vector.load %arg4[%c0_6, %c0_7] : memref<32x32xbf16, #tpu.memory_space<vmem>>, vector<32x32xbf16>
    %cst_8 = arith.constant dense<0.000000e+00> : vector<8x32xf32>
    %11 = tpu.matmul %9, %10, %cst_8 {dimension_numbers = #tpu.dot_dimension_numbers<[1], [0], [0], [1], [0, 0, 1, 1], [], []>} : vector<8x32xbf16>, vector<32x32xbf16>, vector<8x32xf32> -> vector<8x32xf32>
    %c0_9 = arith.constant 0 : index
    %c0_10 = arith.constant 0 : index
    %12 = vector.load %arg5[%c0_9, %c0_10] : memref<1x32xf32, #tpu.memory_space<vmem>>, vector<1x32xf32>
    %13 = vector.broadcast %12 : vector<1x32xf32> to vector<8x32xf32>
    %14 = arith.addf %11, %13 : vector<8x32xf32>
    %cst_11 = arith.constant 0.000000e+00 : f32
    %15 = vector.broadcast %cst_11 : f32 to vector<8x32xf32>
    %16 = arith.maximumf %14, %15 : vector<8x32xf32>
    %c0_12 = arith.constant 0 : index
    %c0_13 = arith.constant 0 : index
    %17 = vector.load %arg6[%c0_12, %c0_13] : memref<1x32xf32, #tpu.memory_space<vmem>>, vector<1x32xf32>
    %cst_14 = arith.constant dense<0.000000e+00> : vector<1x8xf32>
    %18 = tpu.matmul %17, %16, %cst_14 {dimension_numbers = #tpu.dot_dimension_numbers<[1], [1], [0], [0], [0, 0, 1, 0], [], []>} : vector<1x32xf32>, vector<8x32xf32>, vector<1x8xf32> -> vector<1x8xf32>
    %c0_15 = arith.constant 0 : index
    %c0_16 = arith.constant 0 : index
    %19 = vector.load %arg7[%c0_15, %c0_16] : memref<1x1xf32, #tpu.memory_space<vmem>>, vector<1x1xf32>
    %20 = vector.broadcast %19 : vector<1x1xf32> to vector<1x8xf32>
    %21 = arith.addf %18, %20 : vector<1x8xf32>
    %c0_17 = arith.constant 0 : index
    %c0_18 = arith.constant 0 : index
    %c0_19 = arith.constant 0 : index
    %22 = vector.load %arg8[%c0_17, %c0_18, %c0_19] : memref<1x1x8xf32, #tpu.memory_space<vmem>>, vector<1x1x8xf32>
    %23 = vector.shape_cast %22 : vector<1x1x8xf32> to vector<1x8xf32>
    %24 = vector.shape_cast %21 : vector<1x8xf32> to vector<1x1x8xf32>
    tpu.vector_store %arg8[%c0_17, %c0_18, %c0_19], %24 {strides = array<i32>} : memref<1x1x8xf32, #tpu.memory_space<vmem>>, vector<1x1x8xf32>,
    return
  }
  func.func @transform_0(%arg0: i32) -> (i32, i32) {
    %c0_i32 = arith.constant 0 : i32
    %c0_i32_0 = arith.constant 0 : i32
    return %arg0, %c0_i32 : i32, i32
  }
  func.func @transform_1(%arg0: i32) -> (i32, i32) {
    %c0_i32 = arith.constant 0 : i32
    %c0_i32_0 = arith.constant 0 : i32
    %c0_i32_1 = arith.constant 0 : i32
    return %c0_i32, %c0_i32_0 : i32, i32
  }
  func.func @transform_2(%arg0: i32) -> (i32, i32) {
    %c0_i32 = arith.constant 0 : i32
    %c0_i32_0 = arith.constant 0 : i32
    %c0_i32_1 = arith.constant 0 : i32
    return %c0_i32, %c0_i32_0 : i32, i32
  }
  func.func @transform_3(%arg0: i32) -> (i32, i32) {
    %c0_i32 = arith.constant 0 : i32
    %c0_i32_0 = arith.constant 0 : i32
    %c0_i32_1 = arith.constant 0 : i32
    return %c0_i32, %c0_i32_0 : i32, i32
  }
  func.func @transform_4(%arg0: i32) -> (i32, i32) {
    %c0_i32 = arith.constant 0 : i32
    %c0_i32_0 = arith.constant 0 : i32
    %c0_i32_1 = arith.constant 0 : i32
    return %c0_i32, %c0_i32_0 : i32, i32
  }
  func.func @transform_5(%arg0: i32) -> (i32, i32) {
    %c0_i32 = arith.constant 0 : i32
    %c0_i32_0 = arith.constant 0 : i32
    %c0_i32_1 = arith.constant 0 : i32
    return %c0_i32, %c0_i32_0 : i32, i32
  }
  func.func @transform_6(%arg0: i32) -> (i32, i32) {
    %c0_i32 = arith.constant 0 : i32
    %c0_i32_0 = arith.constant 0 : i32
    %c0_i32_1 = arith.constant 0 : i32
    return %c0_i32, %c0_i32_0 : i32, i32
  }
  func.func @transform_7(%arg0: i32) -> (i32, i32, i32) {
    %c0_i32 = arith.constant 0 : i32
    %c0_i32_0 = arith.constant 0 : i32
    %c0_i32_1 = arith.constant 0 : i32
    return %arg0, %c0_i32, %c0_i32_0 : i32, i32, i32
  }
}

</mosaic_0001>

<bundles_post_ra>
// kernel: tpu_custom_call.1
= control target key start
LH: loop header
LB: loop body
LE: loop exit
PB: predicated region body
PF: predicated region fallthrough
CT: control target
= control target key end

     0   :  { %s565_s0 = inlined_call_operand.hbm [shape: f32[8,16], index: 0, kind: input, shape index: {}]   ;;  %s566_s1 = inlined_call_operand.hbm [shape: bf16[16,32], index: 1, kind: input, shape index: {}]   ;;  %s567_s2 = inlined_call_operand.vmem [shape: f32[1,32], index: 2, kind: input, shape index: {}]   ;;  %s568_s3 = inlined_call_operand.hbm [shape: bf16[32,32], index: 3, kind: input, shape index: {}]   ;;  %s569_s4 = inlined_call_operand.vmem [shape: f32[1,32], index: 4, kind: input, shape index: {}]   ;;  %s570_s5 = inlined_call_operand.vmem [shape: f32[1,32], index: 5, kind: input, shape index: {}]   ;;  %s571_s6 = inlined_call_operand.<no memory space> [shape: f32[1,1], index: 6, kind: input, shape index: {}]   ;;  %s572_s7 = inlined_call_operand.hbm [shape: f32[1,1,8], index: 7, kind: output, shape index: {}]  }
   0x1   :  { %v12_v0 = vstv %s571_s6 }
   0x2   :  { %13 = vst [vmem:[#allocation2] sm:$0x1] %v12_v0 }
   0x3   :  { %14 = vsyncpa [#allocation4], 0 }
   0x4   :  { %15 = vsyncpa [#allocation7], 0 }
   0x5   :  { %16 = vsyncpa [#allocation5], 0  ;;  %s447_s26 = smov [#allocation6]   ;;  %s353_s30 = scalar_lea.hbm %s566_s1, 128 }
   0x6   :  { %s32_s27 = sshll.u32 %s447_s26, 4  ;;  %p354_p0 = scmp.ne.s32.totalorder %s566_s1, %s353_s30  ;;  %s33_s27 = int_to_ptr.vmem [resolvable:$true] %s32_s27 }
   0x7   :  { %p357_p1 = scmp.lt.u32.totalorder %s353_s30, %s566_s1 }
   0x9   :  { %p359_p2 = pnand %p357_p1, %p354_p0 }
   0xb   :  { %362 = shalt.err (!%p359_p2)
}
   0xc   :  { %s363_s6 = scalar_lea.vmem %s33_s27, 128  ;;  %p368_p4 = scmp.lt.s32.totalorder %s33_s27, %s33_s27 }
   0xd   :  { %p364_p3 = scmp.ne.s32.totalorder %s33_s27, %s363_s6  ;;  %p369_p5 = scmp.lt.s32.totalorder %s363_s6, %s363_s6 }
   0xf   :  { %p370_p6 = por %p369_p5, %p368_p4 }
  0x11   :  { %p371_p7 = pnand %p370_p6, %p364_p3 }
  0x13   :  { %374 = shalt.err (!%p371_p7)
}
  0x14   :  { %s448_s12 = smov 64   ;;  %s449_s13 = smov 4  }
  0x15   :  { %38 = dma.hbm_to_vmem [thread:$0]  %s566_s1, 128, %s33_s27, [#allocation7], %s448_s12, %s448_s12, %s449_s13  }
  0x16   :  { %s450_s16 = smov [#allocation3]   ;;  %s451_s18 = smov [#allocation8]  }
  0x17   :  { %s23_s17 = sshll.u32 %s450_s16, 4  ;;  %s46_s19 = sshll.u32 %s451_s18, 4  ;;  %s24_s17 = int_to_ptr.vmem [resolvable:$true] %s23_s17  ;;  %s47_s19 = int_to_ptr.vmem [resolvable:$true] %s46_s19 }
  0x18   :  { %s375_s22 = scalar_lea.hbm %s565_s0, 128 }
  0x19   :  { %p376_p8 = scmp.ne.s32.totalorder %s565_s0, %s375_s22  ;;  %p379_p9 = scmp.lt.u32.totalorder %s375_s22, %s565_s0 }
  0x1b   :  { %p381_p10 = pnand %p379_p9, %p376_p8 }
  0x1d   :  { %384 = shalt.err (!%p381_p10)
}
  0x1e   :  { %s385_s1 = scalar_lea.vmem %s24_s17, 128  ;;  %p390_p12 = scmp.lt.s32.totalorder %s24_s17, %s24_s17 }
  0x1f   :  { %p386_p11 = scmp.ne.s32.totalorder %s24_s17, %s385_s1  ;;  %p391_p13 = scmp.lt.s32.totalorder %s385_s1, %s385_s1 }
  0x21   :  { %p392_p0 = por %p391_p13, %p390_p12 }
  0x23   :  { %p393_p1 = pnand %p392_p0, %p386_p11 }
  0x25   :  { %396 = shalt.err (!%p393_p1)
}
  0x26   :  { %26 = dma.hbm_to_vmem [thread:$0]  %s565_s0, 128, %s24_s17, [#allocation4]  }
  0x27   :  { %s397_s8 = scalar_lea.hbm %s568_s3, 256 }
  0x28   :  { %p398_p2 = scmp.ne.s32.totalorder %s568_s3, %s397_s8  ;;  %p401_p3 = scmp.lt.u32.totalorder %s397_s8, %s568_s3 }
  0x2a   :  { %p403_p4 = pnand %p401_p3, %p398_p2 }
  0x2c   :  { %406 = shalt.err (!%p403_p4)
}
  0x2d   :  { %s407_s14 = scalar_lea.vmem %s47_s19, 256  ;;  %p412_p6 = scmp.lt.s32.totalorder %s47_s19, %s47_s19 }
  0x2e   :  { %p408_p5 = scmp.ne.s32.totalorder %s47_s19, %s407_s14  ;;  %p413_p7 = scmp.lt.s32.totalorder %s407_s14, %s407_s14 }
  0x30   :  { %p414_p8 = por %p413_p7, %p412_p6 }
  0x32   :  { %p415_p9 = pnand %p414_p8, %p408_p5 }
  0x34   :  { %418 = shalt.err (!%p415_p9)
}
  0x35   :  { %52 = dma.hbm_to_vmem [thread:$0]  %s568_s3, 256, %s47_s19, [#allocation7], %s448_s12, %s448_s12, %s449_s13  }
  0x36   :  { %441 = dma.done.wait [#allocation4], 128  }
  0x37   :  { %442 = vsyncadd [#allocation4], 4294967168 }
  0x38   :  { %443 = dma.done.wait [#allocation7], 384  }
  0x39   :  { %444 = vsyncadd [#allocation7], 4294966912  ;;  %v452_v1 = vmov 0.0   ;;  %vm453_vm0 = vmmov 0   ;;  %v350_v2 = vld [vmem:[#allocation6] sm:$0xff]   ;;  %v69_v3 = vld [vmem:[#allocation3] sm:$0xff]  ;;  %v207_v25 = vlaneseq }
  0x3a   :  { %321 = vmatprep.subr.bf16.mxu0 %v452_v1  ;;  %323 = vmatprep.mubr.msk.bf16.mxu0 %vm453_vm0, %v452_v1  ;;  %vm86_vm1 = vcmask 130048   ;;  %v70_v4 = vpack.c.bf16 %v69_v3, %v69_v3  ;;  %v351_v5 = vld [vmem:[#allocation8] sm:$0xff]   ;;  %v352_v6 = vld [vmem:[#allocation8 + $0x8] sm:$0xff]   ;;  %vm155_vm2 = vcmask 261120   ;;  %v454_v16 = vmov 0  }
  0x3b   :  { %327 = vmatprep.subr.bf16.mxu1 %v452_v1  ;;  %331 = vmatprep.mubr.msk.bf16.mxu1 %vm453_vm0, %v452_v1  ;;  %v305_v7 = vld [vmem:[%s567_s2] ss:$0 sm:$0xff]  ;;  %v208_v26 = vshrl.u32 %v207_v25, 7  ;;  %vm287_vm3 = vcmask 57344  }
  0x3c   :  { %322 = vmatpush3.bf16.msra.mxu0 %v350_v2  ;;  %328 = vmatpush3.bf16.msra.mxu1 %v351_v5  ;;  %v201_v15 = vld [vmem:[#allocation2] sm:$0x1] }
  0x3d   :  { %335 = vmatprep.subr.mxu0 %v452_v1  ;;  %329 = vmatprep.subr.bf16.mxu1 %v452_v1  ;;  %v308_v17 = vld [vmem:[%s569_s4] ss:$0 sm:$0xff]  ;;  %v209_v27 = vsub.s32 0, %v208_v26  ;;  %s455_s4 = smov [#allocation9]  }
  0x3e   :  { %349 = vset.pattern.permute.xlu0 %v454_v16  ;;  %v200_v24 = vld [vmem:[%s570_s5] sm:$0x1]  ;;  %s295_s18 = sshll.u32 %s455_s4, 4  ;;  %s296_s18 = int_to_ptr.vmem [resolvable:$true] %s295_s18 }
  0x3f   :  { %324 = vmatmul.mubr.msk.bf16.vlgmr.msra.gmra.mrb[0].mxu0 %vm86_vm1, %v70_v4  ;;  %204 = vperm.xlu0 %349, %v201_v15   ;;  %s419_s19 = scalar_lea.vmem %s296_s18, 16  ;;  %s423_s20 = scalar_lea.vmem %s296_s18, 32 }
  0x40   :  { %337 = vmatprep.mubr.msk.f32.mxu0 %vm453_vm0, %v452_v1  ;;  %330 = vmatpush3.bf16.msra.mxu1 %v352_v6  ;;  %p420_p10 = scmp.ne.s32.totalorder %s296_s18, %s419_s19  ;;  %p424_p11 = scmp.lt.s32.totalorder %s296_s18, %s296_s18 }
  0x41   :  { %p425_p12 = scmp.lt.s32.totalorder %s423_s20, %s419_s19 }
  0x43   :  { %p426_p13 = por %p425_p12, %p424_p11 }
  0x45   :  { %p427_p0 = pnand %p426_p13, %p420_p10 }
  0xbe   :  { %v205_v28 = vpop.permute.xlu0 %204 }
  0xbf   :  { %v210_v29 = vrot.slane %v205_v28, %v209_v27 }
 0x112   :  { %v124_v8 = vpop.f32.mrb[0].mxu0 }
 0x113   :  { %v125_v9 = vadd.f32 %v305_v7, %v124_v8  ;;  %v325_v10 = vpop.f32.mrb[1].mxu0 }
 0x114   :  { %v127_v11 = vpop.f32.mrb[2].mxu0 }
 0x115   :  { %v130_v12 = vmax.f32 %v125_v9, 0.0  ;;  %v326_v13 = vpop.f32.mrb[3].mxu0 }
 0x117   :  { %v131_v14 = vpack.c.bf16 %v130_v12, %v130_v12 }
 0x119   :  { %332 = vmatmul.mubr.msk.bf16.vlgmr.msra.gmra.mrb[0].mxu1 %vm155_vm2, %v131_v14 }
 0x1ec   :  { %v193_v18 = vpop.f32.mrb[0].mxu1 }
 0x1ed   :  { %v194_v19 = vadd.f32 %v308_v17, %v193_v18  ;;  %v333_v20 = vpop.f32.mrb[1].mxu1 }
 0x1ee   :  { %v196_v21 = vpop.f32.mrb[2].mxu1 }
 0x1ef   :  { %v199_v22 = vmax.f32 %v194_v19, 0.0  ;;  %v334_v23 = vpop.f32.mrb[3].mxu1 }
 0x1f1   :  { %336 = vmatpush3.xpose.msk.msra.mxu0 %vm155_vm2, %v199_v22 }
 0x1f4   :  { %338 = vmatmul.mubr.msk.f32.vlgmr.msra.gmra.mrb[4].mxu0 %vm155_vm2, %v200_v24 }
 0x2c7   :  { %v283_v30 = vpop.f32.mrb[4].mxu0 }
 0x2c8   :  { %v284_v31 = vadd.f32 %v283_v30, %v210_v29  ;;  %v339_v32 = vpop.f32.mrb[5].mxu0 }
 0x2ca   :  { %288 = vst.msk [vmem:[#allocation9] sm:$0x1] %vm287_vm3, %v284_v31 }
 0x2cb   :  { %430 = shalt.err (!%p427_p0)
}
 0x2cc   :  { %s431_s22 = scalar_lea.hbm %s572_s7, 16 }
 0x2cd   :  { %p432_p1 = scmp.ne.s32.totalorder %s572_s7, %s431_s22  ;;  %p435_p2 = scmp.lt.u32.totalorder %s431_s22, %s572_s7 }
 0x2cf   :  { %p437_p3 = pnand %p435_p2, %p432_p1 }
 0x2d1   :  { %440 = shalt.err (!%p437_p3)
}
 0x2d2   :  { %298 = dma.vmem_to_hbm [thread:$0]  %s296_s18, 16, %s572_s7, [#allocation5]  }
 0x2d3   :  { %445 = dma.done.wait [#allocation5], 16  }
 0x2d4   :  { %446 = vsyncadd [#allocation5], 4294967280 }
 0x2d5   :  { %302 = vsyncpa [#allocation4], 1 }
 0x2d6   :  { %303 = vsyncpa [#allocation7], 1 }
 0x2d7   :  { %304 = vsyncpa [#allocation5], 1 }

</bundles_post_ra>
